<compile_context>
chip_gen: v5e
topology: v5e:2x2
jax: 0.10.0
libtpu: 0.0.40
codegen_flags: <defaults>
</compile_context>

<pallas_src>
import functools

import jax
import jax.numpy as jnp
from jax.experimental import pallas as pl
from jax.experimental.pallas import tpu as pltpu

_EPS = 1e-5


def _stats_kernel(xy_ref, sum_ref, ssq_ref, *, c, split_in_regs):
    """Accumulate per-channel sum / sum-of-squares of the x (BN) half.

    xy_ref : (1, CBIN, MT) tile of the (N, 2C, H*W) input. CBIN == c when the
             x half can be DMA'd alone (c % 8 == 0), else CBIN == 2c.
    sum_ref, ssq_ref : (1, c, 1) f32 per-sample accumulators, revisited across
             the lane-tile grid axis.
    """
    @pl.when(pl.program_id(1) == 0)
    def _init():
        sum_ref[...] = jnp.zeros_like(sum_ref)
        ssq_ref[...] = jnp.zeros_like(ssq_ref)

    if split_in_regs:
        x = xy_ref[0][:c].astype(jnp.float32)          # (c, MT) value-slice
    else:
        x = xy_ref[0].astype(jnp.float32)              # block is exactly the x half

    sum_ref[0, :, :] += jnp.sum(x, axis=1, keepdims=True)
    ssq_ref[0, :, :] += jnp.sum(x * x, axis=1, keepdims=True)


def _apply_kernel(scale_ref, shift_ref, xy_ref, o_ref, *, c, split_in_regs):
    """out = relu(x * scale + shift) * sigmoid(y) for one (1, 2c, MT) tile."""
    if split_in_regs:
        xy = xy_ref[0].astype(jnp.float32)             # (2c, MT); split in registers
        x, y = xy[:c], xy[c:]
    else:
        x = xy_ref[0, :c, :].astype(jnp.float32)       # tile-aligned sublane slices
        y = xy_ref[0, c:2 * c, :].astype(jnp.float32)

    x_hat = x * scale_ref[...] + shift_ref[...]        # folded BN affine: 2 VALU ops/elem
    o_ref[0, :, :] = (jnp.maximum(x_hat, 0.0) * jax.nn.sigmoid(y)).astype(o_ref.dtype)


def _pick_lane_tile(hw, c2, itemsize):
    """Largest multiple-of-128 tile that divides hw and fits a small VMEM budget."""
    budget = 8 * 1024 * 1024                     # conservative across v5e/v6e/v7x
    per_lane = (c2 + c2 // 2) * itemsize * 2     # in + out blocks, 2-deep buffering
    cap = max(128, (budget // per_lane) // 128 * 128)
    if hw % 128 == 0:
        for t in (4096, 2048, 1024, 512, 384, 256, 128):
            if t <= cap and hw % t == 0:
                return t
    return hw                                    # full row: always a legal block extent


def gated_activation(x_nchw, gamma, beta):
    """x_nchw: (N, 2C, H, W); gamma/beta: (C,). Returns (N, C, H, W) in x_nchw.dtype."""
    N, C2, H, W = x_nchw.shape
    C = C2 // 2
    HW = H * W
    dtype = x_nchw.dtype

    xy = x_nchw.reshape(N, C2, HW)               # free reshape, no HBM copy
    MT = _pick_lane_tile(HW, C2, jnp.dtype(dtype).itemsize)
    n_m = HW // MT

    aligned = (C % 8 == 0)
    cbin = C if aligned else C2                  # stats pass DMAs only the x half if legal

    # ---- Pass 1: per-sample partial sum / sumsq per channel ---------------------
    sum_part, ssq_part = pl.pallas_call(
        functools.partial(_stats_kernel, c=C, split_in_regs=not aligned),
        grid=(N, n_m),
        in_specs=[pl.BlockSpec((1, cbin, MT), lambda n, m: (n, 0, m))],
        out_specs=(
            pl.BlockSpec((1, C, 1), lambda n, m: (n, 0, 0)),
            pl.BlockSpec((1, C, 1), lambda n, m: (n, 0, 0)),
        ),
        out_shape=(
            jax.ShapeDtypeStruct((N, C, 1), jnp.float32),
            jax.ShapeDtypeStruct((N, C, 1), jnp.float32),
        ),
        compiler_params=pltpu.CompilerParams(
            dimension_semantics=("parallel", "arbitrary")),
    )(xy)

    # ---- Finalize per-channel affine (O(C) scalar work) -------------------------
    m_count = jnp.float32(N * HW)
    mean = jnp.sum(sum_part, axis=0) / m_count                     # (C, 1)
    var = jnp.maximum(jnp.sum(ssq_part, axis=0) / m_count - mean * mean, 0.0)
    inv_std = 1.0 / jnp.sqrt(var + _EPS)
    scale = inv_std * gamma.reshape(C, 1).astype(jnp.float32)      # (C, 1)
    shift = beta.reshape(C, 1).astype(jnp.float32) - mean * scale
    # TODO(synk): PyTorch BatchNorm2d also updates running_mean/running_var buffers
    # (training side effect only); not materialized since it does not affect the output.

    # ---- Pass 2: normalize + gate, fully elementwise ----------------------------
    out = pl.pallas_call(
        functools.partial(_apply_kernel, c=C, split_in_regs=not aligned),
        grid=(N, n_m),
        in_specs=[
            pl.BlockSpec((C, 1), lambda n, m: (0, 0)),             # scale
            pl.BlockSpec((C, 1), lambda n, m: (0, 0)),             # shift
            pl.BlockSpec((1, C2, MT), lambda n, m: (n, 0, m)),     # both halves
        ],
        out_specs=pl.BlockSpec((1, C, MT), lambda n, m: (n, 0, m)),
        out_shape=jax.ShapeDtypeStruct((N, C, HW), dtype),
        compiler_params=pltpu.CompilerParams(
            dimension_semantics=("parallel", "parallel")),
    )(scale, shift, xy)

    return out.reshape(N, C, H, W)               # free reshape back to NCHW


def _reference(x_nchw, gamma, beta):
    N, C2, H, W = x_nchw.shape
    C = C2 // 2
    x = x_nchw[:, :C].astype(jnp.float32)
    y = x_nchw[:, C:].astype(jnp.float32)
    mean = jnp.mean(x, axis=(0, 2, 3), keepdims=True)
    var = jnp.mean((x - mean) ** 2, axis=(0, 2, 3), keepdims=True)
    x_hat = (x - mean) / jnp.sqrt(var + _EPS)
    x_hat = x_hat * gamma.reshape(1, C, 1, 1) + beta.reshape(1, C, 1, 1)
    return jax.nn.relu(x_hat) * jax.nn.sigmoid(y)


if __name__ == "__main__":
    key = jax.random.PRNGKey(0)

    # Exercise both channel paths: C % 8 != 0 (in-register split) and C % 8 == 0.
    for hidden_size, (N, H, W) in [(4, (2, 16, 16)), (8, (2, 16, 16))]:
        kx, kg, kb, key = jax.random.split(key, 4)
        x = jax.random.normal(kx, (N, 2 * hidden_size, H, W), dtype=jnp.float32)
        gamma = 1.0 + 0.1 * jax.random.normal(kg, (hidden_size,), dtype=jnp.float32)
        beta = 0.1 * jax.random.normal(kb, (hidden_size,), dtype=jnp.float32)

        out = jax.block_until_ready(gated_activation(x, gamma, beta))
        ref = _reference(x, gamma, beta)
        assert out.shape == (N, hidden_size, H, W)
        assert out.dtype == x.dtype
        assert jnp.allclose(out, ref, atol=2e-5, rtol=2e-5), (
            "max abs err = %g" % float(jnp.max(jnp.abs(out - ref))))

    print("KERNEL_OK")
</pallas_src>

<mosaic_0001>
module attributes {stable_mosaic.version = 11 : i64} {
  func.func @_stats_kernel(%arg0: i32, %arg1: i32, %arg2: memref<1x8x256xf32, #tpu.memory_space<vmem>>, %arg3: memref<1x4x1xf32, #tpu.memory_space<vmem>>, %arg4: memref<1x4x1xf32, #tpu.memory_space<vmem>>) attributes {dimension_semantics = [#tpu.dimension_semantics<parallel>, #tpu.dimension_semantics<arbitrary>], iteration_bounds = array<i64: 2, 1>, scalar_prefetch = 0 : i64, scratch_operands = 0 : i64, tpu.core_type = #tpu.core_type<tc>, window_params = [{transform_indices = @transform_0, window_bounds = array<i64: 1, 8, 256>}, {transform_indices = @transform_1, window_bounds = array<i64: 1, 4, 1>}, {transform_indices = @transform_2, window_bounds = array<i64: 1, 4, 1>}]} {
    %c0_i32 = arith.constant 0 : i32
    %0 = arith.cmpi eq, %arg1, %c0_i32 : i32
    %1 = arith.extui %0 : i1 to i32
    %c0_i32_0 = arith.constant 0 : i32
    %2 = arith.cmpi ne, %1, %c0_i32_0 : i32
    scf.if %2 {
      %cst_16 = arith.constant 0.000000e+00 : f32
      %23 = vector.broadcast %cst_16 : f32 to vector<1x4x1xf32>
      %c0_17 = arith.constant 0 : index
      %c0_18 = arith.constant 0 : index
      %c0_19 = arith.constant 0 : index
      %24 = vector.load %arg3[%c0_17, %c0_18, %c0_19] : memref<1x4x1xf32, #tpu.memory_space<vmem>>, vector<1x4x1xf32>
      tpu.vector_store %arg3[%c0_17, %c0_18, %c0_19], %23 {strides = array<i32>} : memref<1x4x1xf32, #tpu.memory_space<vmem>>, vector<1x4x1xf32>,
      %cst_20 = arith.constant 0.000000e+00 : f32
      %25 = vector.broadcast %cst_20 : f32 to vector<1x4x1xf32>
      %c0_21 = arith.constant 0 : index
      %c0_22 = arith.constant 0 : index
      %c0_23 = arith.constant 0 : index
      %26 = vector.load %arg4[%c0_21, %c0_22, %c0_23] : memref<1x4x1xf32, #tpu.memory_space<vmem>>, vector<1x4x1xf32>
      tpu.vector_store %arg4[%c0_21, %c0_22, %c0_23], %25 {strides = array<i32>} : memref<1x4x1xf32, #tpu.memory_space<vmem>>, vector<1x4x1xf32>,
    } else {
    }
    %c0 = arith.constant 0 : index
    %c0_1 = arith.constant 0 : index
    %c0_2 = arith.constant 0 : index
    %3 = vector.load %arg2[%c0, %c0_1, %c0_2] : memref<1x8x256xf32, #tpu.memory_space<vmem>>, vector<1x8x256xf32>
    %4 = vector.shape_cast %3 : vector<1x8x256xf32> to vector<8x256xf32>
    %5 = vector.extract_strided_slice %4 {offsets = [0, 0], sizes = [4, 256], strides = [1, 1]} : vector<8x256xf32> to vector<4x256xf32>
    %c0_3 = arith.constant 0 : index
    %c0_4 = arith.constant 0 : index
    %c0_5 = arith.constant 0 : index
    %6 = vector.load %arg3[%c0_3, %c0_4, %c0_5] : memref<1x4x1xf32, #tpu.memory_space<vmem>>, vector<1x4x1xf32>
    %7 = vector.shape_cast %6 : vector<1x4x1xf32> to vector<4x1xf32>
    %cst = arith.constant dense<0.000000e+00> : vector<4xf32>
    %8 = vector.multi_reduction <add>, %5, %cst [1] : vector<4x256xf32> to vector<4xf32>
    %9 = vector.shape_cast %8 : vector<4xf32> to vector<4x1xf32>
    %10 = arith.addf %7, %9 : vector<4x1xf32>
    %c0_6 = arith.constant 0 : index
    %c0_7 = arith.constant 0 : index
    %c0_8 = arith.constant 0 : index
    %11 = vector.load %arg3[%c0_6, %c0_7, %c0_8] : memref<1x4x1xf32, #tpu.memory_space<vmem>>, vector<1x4x1xf32>
    %12 = vector.shape_cast %11 : vector<1x4x1xf32> to vector<4x1xf32>
    %13 = vector.shape_cast %10 : vector<4x1xf32> to vector<1x4x1xf32>
    tpu.vector_store %arg3[%c0_6, %c0_7, %c0_8], %13 {strides = array<i32>} : memref<1x4x1xf32, #tpu.memory_space<vmem>>, vector<1x4x1xf32>,
    %c0_9 = arith.constant 0 : index
    %c0_10 = arith.constant 0 : index
    %c0_11 = arith.constant 0 : index
    %14 = vector.load %arg4[%c0_9, %c0_10, %c0_11] : memref<1x4x1xf32, #tpu.memory_space<vmem>>, vector<1x4x1xf32>
    %15 = vector.shape_cast %14 : vector<1x4x1xf32> to vector<4x1xf32>
    %16 = arith.mulf %5, %5 : vector<4x256xf32>
    %cst_12 = arith.constant dense<0.000000e+00> : vector<4xf32>
    %17 = vector.multi_reduction <add>, %16, %cst_12 [1] : vector<4x256xf32> to vector<4xf32>
    %18 = vector.shape_cast %17 : vector<4xf32> to vector<4x1xf32>
    %19 = arith.addf %15, %18 : vector<4x1xf32>
    %c0_13 = arith.constant 0 : index
    %c0_14 = arith.constant 0 : index
    %c0_15 = arith.constant 0 : index
    %20 = vector.load %arg4[%c0_13, %c0_14, %c0_15] : memref<1x4x1xf32, #tpu.memory_space<vmem>>, vector<1x4x1xf32>
    %21 = vector.shape_cast %20 : vector<1x4x1xf32> to vector<4x1xf32>
    %22 = vector.shape_cast %19 : vector<4x1xf32> to vector<1x4x1xf32>
    tpu.vector_store %arg4[%c0_13, %c0_14, %c0_15], %22 {strides = array<i32>} : memref<1x4x1xf32, #tpu.memory_space<vmem>>, vector<1x4x1xf32>,
    return
  }
  func.func @transform_0(%arg0: i32, %arg1: i32) -> (i32, i32, i32) {
    %c0_i32 = arith.constant 0 : i32
    %c0_i32_0 = arith.constant 0 : i32
    return %arg0, %c0_i32, %arg1 : i32, i32, i32
  }
  func.func @transform_1(%arg0: i32, %arg1: i32) -> (i32, i32, i32) {
    %c0_i32 = arith.constant 0 : i32
    %c0_i32_0 = arith.constant 0 : i32
    %c0_i32_1 = arith.constant 0 : i32
    return %arg0, %c0_i32, %c0_i32_0 : i32, i32, i32
  }
  func.func @transform_2(%arg0: i32, %arg1: i32) -> (i32, i32, i32) {
    %c0_i32 = arith.constant 0 : i32
    %c0_i32_0 = arith.constant 0 : i32
    %c0_i32_1 = arith.constant 0 : i32
    return %arg0, %c0_i32, %c0_i32_0 : i32, i32, i32
  }
}

</mosaic_0001>

<bundles_post_ra>
// kernel: tpu_custom_call.1
= control target key start
LH: loop header
LB: loop body
LE: loop exit
PB: predicated region body
PF: predicated region fallthrough
CT: control target
= control target key end

     0   :  { %8 = vsyncpa [#allocation3], 0  ;;  %s589_s0 = inlined_call_operand.hbm [shape: f32[2,8,256], index: 0, kind: input, shape index: {}]   ;;  %s590_s1 = inlined_call_operand.vmem [shape: f32[2,4,1], index: 1, kind: output, shape index: {0}]   ;;  %s591_s2 = inlined_call_operand.vmem [shape: f32[2,4,1], index: 2, kind: output, shape index: {1}]  }
   0x1   :  { %10 = vsyncpa [#allocation3 + $0x1], 0  ;;  %s494_s9 = smov 0   ;;  %s496_s10 = smov 0  }
   0x2   :  { %s498_s11 = smov 0   ;;  %s500_s12 = smov 0  }
   0x3   :  { %s502_s13 = smov 0   ;;  %s504_s14 = smov 0  }
   0x4 LB: > { %s326_s15 = sadd.s32 4294967295, %s476_s14   ;;  %s28_s16 = sadd.s32 1, %s472_s13  ;;  %s476_s14 = sphi %s504_s14, %s16_s14   ;;  %s472_s13 = sphi %s502_s13, %s598_s13   ;;  %s468_s12 = sphi %s500_s12, %s597_s12   ;;  %s464_s11 = sphi %s498_s11, %s596_s11   ;;  %s460_s10 = sphi %s496_s10, %s595_s10   ;;  %s456_s9 = sphi %s494_s9, %s594_s9  }
   0x5   : > { %p30_p0 = scmp.ge.s32.totalorder %s28_s16, 2  ;;  %s37_s17 = sadd.s32 1, %s464_s11 }
   0x6   : > { %p44_p1 = scmp.ne.s32.totalorder %s464_s11, %s460_s10  ;;  %p45_p2 = scmp.eq.s32.totalorder %s476_s14, 0 }
   0x7   : > { %s600_s16 = smov (%p30_p0, %s28_s16), 0  ;;  %p50_p4 = scmp.ne.s32.totalorder %s460_s10, %s456_s9 }
   0x8   : > { %p530_p3 = por %p45_p2, %p44_p1  ;;  %s32_s19 = ssub.s32 %s472_s13, %s600_s16 }
   0x9   : > { %p51_p5 = scmp.eq.s32.totalorder %s326_s15, 0  ;;  %p35_p6 = scmp.eq.s32.totalorder %s32_s19, 0 }
   0xa   : > { %p346_p8 = scmp.lt.s32.totalorder %s476_s14, 2  ;;  %s126_s22 = sand.u32 1, %s464_s11  }
   0xb   : > { %p537_p7 = por %p51_p5, %p50_p4  ;;  %s339_s23 = sshll.u32 %s472_s13, 4 }
   0xc   : > { %s543_s21 = scalar_select %p35_p6, %s464_s11, %s37_s17  }
   0xd   : > { %s330_s24 = sshll.u32 %s126_s22, 4  ;;  %s137_s27 = scalar_lea.hbm %s589_s0, %s339_s23 }
   0xe   : > { %s139_s28 = sshll.u32 %s137_s27, 4  ;;  %s130_s29 = scalar_lea.vmem [#allocation2], %s330_s24  ;;  %s140_s28 = int_to_ptr.hbm [resolvable:$true] %s139_s28 }
   0xf   : > { %s141_s30 = sshll.u32 %s130_s29, 4  ;;  %p343_p9 = pnand %p346_p8, %p530_p3  ;;  %s142_s30 = int_to_ptr.vmem [resolvable:$true] %s141_s30 }
  0x10   : > { %p333_p10 = scmp.ge.s32.totalorder %s476_s14, 1  ;;  %p146_p11 = scmp.lt.s32.totalorder %s476_s14, 3 }
  0x11   : > { %s127_s3 = scalar_lea.sflag [#allocation3], %s126_s22 }
  0x12   : > { %345 = dma.hbm_to_vmem [thread:$0]  (!%p343_p9), %s140_s28, 256, %s142_s30, %s127_s3  }
  0x13   : > { %p147_p12 = pnand %p333_p10, %p146_p11 }
  0x14   : > { %s152_s4 = sand.u32 (!%p147_p12), 1, %s460_s10  }
  0x15   : > { %150 = sbr.rel (%p147_p12) target bundleno = 159 (0x9f), region = 24  ;;  %s334_s5 = sshll.u32 (!%p147_p12), %s152_s4, 4 }
  0x16   : > { %s153_s6 = scalar_lea.sflag (!%p147_p12), [#allocation3], %s152_s4  ;;  %s156_s7 = scalar_lea.vmem (!%p147_p12), [#allocation2], %s334_s5 }
  0x1a   : > { %451 = dma.done.wait (%p537_p7), %s153_s6, 256  }
  0x1b   : > { %453 = vsyncadd (%p537_p7), %s153_s6, 4294967040  ;;  %p182_p13 = scmp.lt.s32.totalorder %s468_s12, 1  ;;  %vm194_vm0 = vcmask 3072   ;;  %vm200_vm1 = vcmask 1043456   ;;  %v478_v0 = vmov 0.0   ;;  %v197_v1 = vld [vmem:[%s156_s7] sm:$0xff] }
  0x1c   : > { %v198_v2 = vld [vmem:[%s156_s7 + $0x8] sm:$0xff]  ;;  %v201_v3 = vsel %vm200_vm1, %v197_v1, 0.0  ;;  %v210_v5 = vmul.f32 %v197_v1, %v197_v1 }
  0x1d   : > { %s602_s12 = smov (!%p182_p13, %s468_s12), 1  ;;  %v202_v4 = vsel %vm200_vm1, %v198_v2, 0.0  ;;  %v211_v6 = vmul.f32 %v198_v2, %v198_v2 }
  0x1e   : > { %s335_s8 = sshll.u32 %s602_s12, 2  ;;  %v203_v7 = vadd.f32 %v202_v4, %v201_v3  ;;  %v212_v8 = vsel %vm200_vm1, %v210_v5, 0.0 }
  0x1f   : > { %s185_s17 = scalar_lea.vmem %s590_s1, %s335_s8  ;;  %s189_s22 = scalar_lea.vmem %s591_s2, %s335_s8  ;;  %v213_v9 = vsel %vm200_vm1, %v211_v6, 0.0 }
  0x20   : > { %195 = vst.msk [vmem:[%s185_s17] sm:$0xf] %vm194_vm0, %v478_v0  ;;  %204 = vadd.xlane.f32.xlu0 %v203_v7  ;;  %v214_v10 = vadd.f32 %v213_v9, %v212_v8 }
  0x21   : > { %196 = vst.msk [vmem:[%s189_s22] sm:$0xf] %vm194_vm0, %v478_v0 }
  0x27   : > { %v199_v11 = vld [vmem:[%s185_s17] sm:$0xf] }
  0x28   : > { %215 = vadd.xlane.f32.xlu0 %v214_v10  ;;  %v209_v14 = vld [vmem:[%s189_s22] sm:$0xf] }
  0x93   : > { %v205_v12 = vpop.xlane.xlu0 %204 }
  0x94   : > { %v206_v13 = vadd.f32 %v205_v12, %v199_v11 }
  0x96   : > { %208 = vst.msk [vmem:[%s185_s17] sm:$0xf] %vm194_vm0, %v206_v13 }
  0x9b   : > { %v216_v15 = vpop.xlane.xlu0 %215 }
  0x9c   : > { %v217_v16 = vadd.f32 %v216_v15, %v209_v14 }
  0x9e   : > { %218 = vst.msk [vmem:[%s189_s22] sm:$0xf] %vm194_vm0, %v217_v16 }
  0x9f PF: > { %s16_s14 = sadd.s32 1, %s476_s14   ;;  %s594_s9 = smov %s460_s10 }
  0xa0   : > { %p13_p0 = scmp.ge.s32.totalorder %s16_s14, 4   ;;  %s595_s10 = smov %s464_s11 }
  0xa1   : > { %s596_s11 = smov %s543_s21  ;;  %s597_s12 = smov %s472_s13 }
  0xa2   : > { %s598_s13 = smov %s600_s16  ;;  %15 = sbr.rel (!%p13_p0) target bundleno = 4 (0x4), region = 80 }
  0xa7   :  { %252 = vsyncpa [#allocation3], 1 }
  0xa8   :  { %254 = vsyncpa [#allocation3 + $0x1], 1 }

</bundles_post_ra>
